<compile_context>
chip_gen: v7x
topology: tpu7x:2x2x1
jax: 0.10.0
libtpu: 0.0.40
codegen_flags: <defaults>
</compile_context>

<pallas_src>
import functools

import jax
import jax.numpy as jnp
from jax.experimental import pallas as pl
from jax.experimental.pallas import tpu as pltpu


BN_EPS = 1e-5
LANE = 128


def _round_up(x, m):
    return ((x + m - 1) // m) * m


def _pad2(a, rows, cols):
    r, c = a.shape
    return jnp.pad(a, ((0, rows - r), (0, cols - c)))


def _pick_tile(dim, preferred):
    """Largest tile <= preferred that divides dim (dims are 128/16 padded)."""
    for t in (1024, 512, 384, 256, 128, 64, 32, 16, 8):
        if t <= preferred and t <= dim and dim % t == 0:
            return t
    return dim


def _vmem_capacity_bytes():
    try:
        return int(pltpu.get_tpu_info().vmem_capacity_bytes)
    except Exception:
        return 64 * 1024 * 1024        # conservative: v7x per-TensorCore VMEM


# ============================================================================
# Path A: whole-forward fusion (small graphs, everything resident in VMEM)
# ============================================================================
def _make_fused_forward_kernel(n_pre, n_conv, n_post):
    """Kernel refs: a_norm, pool, x, (w, shift)*L, out (all VMEM-resident)."""

    def kernel(*refs):
        a_ref, p_ref, x_ref = refs[0], refs[1], refs[2]
        out_ref = refs[-1]
        lrefs = refs[3:-1]
        idx = [0]

        def take():
            w = lrefs[idx[0]][...]        # bf16 (folded BN scale already in W)
            s = lrefs[idx[0] + 1][...]    # f32 shift row (1, C)
            idx[0] += 2
            return w, s

        h = x_ref[...]                    # bf16 activations, stay on-chip
        a = a_ref[...]                    # normalized adjacency, loaded once

        # pre-FC: ReLU(X @ Wf + shift)   (BN folded into Wf/shift)
        for _ in range(n_pre):
            w, s = take()
            z = jnp.dot(h, w, preferred_element_type=jnp.float32) + s
            h = jnp.maximum(z, 0.0).astype(jnp.bfloat16)

        # GCNConv: ReLU(A_norm @ (X @ Wf) + shift); dropout is identity (eval)
        for _ in range(n_conv):
            w, s = take()
            xw = jnp.dot(h, w, preferred_element_type=jnp.float32)
            z = jnp.dot(a, xw.astype(jnp.bfloat16),
                        preferred_element_type=jnp.float32) + s
            h = jnp.maximum(z, 0.0).astype(jnp.bfloat16)

        # global_mean_pool as dense pooling matmul (no affine, no relu)
        h = jnp.dot(p_ref[...], h,
                    preferred_element_type=jnp.float32).astype(jnp.bfloat16)

        # post-FC
        for _ in range(n_post):
            w, s = take()
            z = jnp.dot(h, w, preferred_element_type=jnp.float32) + s
            h = jnp.maximum(z, 0.0).astype(jnp.bfloat16)

        # output head (out_dim -> 1, padded to 128 lanes; sliced outside)
        w, s = take()
        out = jnp.dot(h, w, preferred_element_type=jnp.float32) + s
        out_ref[...] = out.astype(out_ref.dtype)

    return kernel


def gcn_forward_fused(fp, x, edge_index, edge_weight, batch, num_graphs,
                      vmem_limit_bytes):
    n = x.shape[0]
    n_pad = _round_up(n, LANE)
    g_pad = _round_up(num_graphs, 16)

    a = _pad2(build_gcn_adjacency(edge_index, edge_weight, n),
              n_pad, n_pad).astype(jnp.bfloat16)
    p = _pad2(build_mean_pool_matrix(batch, num_graphs),
              g_pad, n_pad).astype(jnp.bfloat16)
    xp = _pad2(x, n_pad, fp["in_pad"]).astype(jnp.bfloat16)

    layer_args = []
    for w, s in fp["pre_fc"] + fp["convs"] + fp["post_fc"] + [fp["head"]]:
        layer_args += [w, s]
    args = [a, p, xp] + layer_args

    kernel = _make_fused_forward_kernel(
        len(fp["pre_fc"]), len(fp["convs"]), len(fp["post_fc"]))

    head_out = fp["head"][0].shape[1]
    # Grid-less call: every input is single-buffered in VMEM (no pointless
    # double buffering of the full A_norm as with grid=(1,)).
    vmem_spec = pl.BlockSpec(memory_space=pltpu.MemorySpace.VMEM)
    out = pl.pallas_call(
        kernel,
        out_shape=jax.ShapeDtypeStruct((g_pad, head_out), jnp.float32),
        in_specs=[vmem_spec] * len(args),
        out_specs=vmem_spec,
        compiler_params=pltpu.CompilerParams(
            vmem_limit_bytes=int(vmem_limit_bytes)),
    )(*args)
    return out[:num_graphs, :1]


# ============================================================================
# Path B: tiled kernels (scale beyond VMEM)
# ============================================================================
def _matmul_single_k_kernel(*refs, apply_relu, has_shift):
    """Whole contraction in one program: no scratch, no init/finalize."""
    if has_shift:
        x_ref, w_ref, s_ref, o_ref = refs
    else:
        x_ref, w_ref, o_ref = refs
        s_ref = None
    out = jnp.dot(x_ref[...], w_ref[...], preferred_element_type=jnp.float32)
    if has_shift:
        out = out + s_ref[...]
    if apply_relu:
        out = jnp.maximum(out, 0.0)
    o_ref[...] = out.astype(o_ref.dtype)


def _matmul_multi_k_kernel(*refs, apply_relu, has_shift):
    if has_shift:
        x_ref, w_ref, s_ref, o_ref, acc_ref = refs
    else:
        x_ref, w_ref, o_ref, acc_ref = refs
        s_ref = None
    k = pl.program_id(2)

    @pl.when(k == 0)
    def _():
        acc_ref[...] = jnp.zeros_like(acc_ref)

    acc_ref[...] += jnp.dot(x_ref[...], w_ref[...],
                            preferred_element_type=jnp.float32)

    @pl.when(k == pl.num_programs(2) - 1)
    def _():
        out = acc_ref[...]
        if has_shift:
            out = out + s_ref[...]
        if apply_relu:
            out = jnp.maximum(out, 0.0)
        o_ref[...] = out.astype(o_ref.dtype)


def matmul_affine_tiled(x, w, shift=None, apply_relu=False,
                        out_dtype=jnp.bfloat16, tm=512, tn=128, tk=512):
    """out = maybe_relu(x @ w (+ shift)); bf16 MXU operands, f32 accumulate."""
    M, K = x.shape
    K2, N = w.shape
    assert K == K2
    tm, tn, tk = _pick_tile(M, tm), _pick_tile(N, tn), _pick_tile(K, tk)
    gm, gn, gk = M // tm, N // tn, K // tk
    has_shift = shift is not None

    if gk == 1:
        # Every FC layer here (K = 128 = tk): skip the f32 VMEM accumulator
        # and the k==0 / k==last control flow entirely.
        in_specs = [pl.BlockSpec((tm, K), lambda i, j: (i, 0)),
                    pl.BlockSpec((K, tn), lambda i, j: (0, j))]
        args = [x, w]
        if has_shift:
            in_specs.append(pl.BlockSpec((1, tn), lambda i, j: (0, j)))
            args.append(shift)
        kernel = functools.partial(_matmul_single_k_kernel,
                                   apply_relu=apply_relu, has_shift=has_shift)
        return pl.pallas_call(
            kernel,
            out_shape=jax.ShapeDtypeStruct((M, N), out_dtype),
            grid=(gm, gn),
            in_specs=in_specs,
            out_specs=pl.BlockSpec((tm, tn), lambda i, j: (i, j)),
            compiler_params=pltpu.CompilerParams(
                dimension_semantics=("parallel", "parallel")),
        )(*args)

    in_specs = [pl.BlockSpec((tm, tk), lambda i, j, k: (i, k)),
                pl.BlockSpec((tk, tn), lambda i, j, k: (k, j))]
    args = [x, w]
    if has_shift:
        in_specs.append(pl.BlockSpec((1, tn), lambda i, j, k: (0, j)))
        args.append(shift)
    kernel = functools.partial(_matmul_multi_k_kernel,
                               apply_relu=apply_relu, has_shift=has_shift)
    return pl.pallas_call(
        kernel,
        out_shape=jax.ShapeDtypeStruct((M, N), out_dtype),
        grid_spec=pltpu.PrefetchScalarGridSpec(
            num_scalar_prefetch=0, grid=(gm, gn, gk),
            in_specs=in_specs,
            out_specs=pl.BlockSpec((tm, tn), lambda i, j, k: (i, j)),
            scratch_shapes=[pltpu.VMEM((tm, tn), jnp.float32)]),
        compiler_params=pltpu.CompilerParams(
            dimension_semantics=("parallel", "parallel", "arbitrary")),
    )(*args)


def gcn_forward_tiled(fp, x, edge_index, edge_weight, batch, num_graphs):
    n = x.shape[0]
    n_pad = _round_up(n, LANE)
    g_pad = _round_up(num_graphs, 16)

    a = _pad2(build_gcn_adjacency(edge_index, edge_weight, n),
              n_pad, n_pad).astype(jnp.bfloat16)
    p = _pad2(build_mean_pool_matrix(batch, num_graphs),
              g_pad, n_pad).astype(jnp.bfloat16)
    h = _pad2(x, n_pad, fp["in_pad"]).astype(jnp.bfloat16)

    for w, s in fp["pre_fc"]:
        h = matmul_affine_tiled(h, w, s, apply_relu=True)
    for w, s in fp["convs"]:
        # Precompute H = X @ Wf ONCE (N_pad x 128 bf16, tiny); the dominant
        # HBM-bound aggregation then streams A exactly once per layer.
        hw = matmul_affine_tiled(h, w)
        h = matmul_affine_tiled(a, hw, s, apply_relu=True)
    h = matmul_affine_tiled(p, h)                       # mean pool, no affine
    for w, s in fp["post_fc"]:
        h = matmul_affine_tiled(h, w, s, apply_relu=True)
    w, s = fp["head"]
    out = matmul_affine_tiled(h, w, s, out_dtype=jnp.float32)
    return out[:num_graphs, :1]


# ============================================================================
# Dispatch (generation-aware VMEM budget)
# ============================================================================
def _fused_resident_bytes(fp, n_pad, g_pad):
    in_pad = fp["in_pad"]
    b = n_pad * n_pad * 2            # A_norm bf16
    b += g_pad * n_pad * 2           # pool matrix bf16
    b += n_pad * in_pad * 2          # padded features bf16
    for w, s in fp["pre_fc"] + fp["convs"] + fp["post_fc"] + [fp["head"]]:
        b += w.size * 2 + s.size * 4
    widest = max(in_pad, LANE)
    b += 3 * n_pad * widest * 4      # in-kernel f32 intermediates (conservative)
    b += g_pad * LANE * 4            # output
    return b


def gcn_forward(fp, x, edge_index, edge_weight, batch, num_graphs):
    """Single fused kernel when the whole resident set fits VMEM comfortably."""
    n_pad = _round_up(x.shape[0], LANE)
    g_pad = _round_up(num_graphs, 16)
    cap = _vmem_capacity_bytes()
    budget = _fused_resident_bytes(fp, n_pad, g_pad)
    # Keep fused residency under ~3/8 of per-core VMEM: ~24 MiB on v7x
    # (64 MiB/TC), ~48 MiB on v5e/v6e (128 MiB).  Beyond that, the tiled path
    # (megacore-sharded, 512-wide tiles) wins.
    if budget <= (cap * 3) // 8:
        vmem_limit = int(min(cap - (8 << 20), max(2 * budget, 32 << 20)))
        return gcn_forward_fused(fp, x, edge_index, edge_weight, batch,
                                 num_graphs, vmem_limit)
    return gcn_forward_tiled(fp, x, edge_index, edge_weight, batch, num_graphs)


# ============================================================================
# Graph / parameter preparation (plain-JAX glue, done outside the kernels)
# ============================================================================
def build_gcn_adjacency(edge_index, edge_weight, num_nodes):
    """Dense D^{-1/2} (A + I) D^{-1/2}; A[dst, src] = edge_weight."""
    src, dst = edge_index[0], edge_index[1]
    a = jnp.zeros((num_nodes, num_nodes), jnp.float32)
    a = a.at[dst, src].add(edge_weight)
    a = a + jnp.eye(num_nodes, dtype=jnp.float32)       # self loops (fill=1)
    deg = a.sum(axis=1)
    dinv = jnp.where(deg > 0, 1.0 / jnp.sqrt(deg), 0.0)
    return dinv[:, None] * a * dinv[None, :]


def build_mean_pool_matrix(batch, num_graphs):
    onehot = (batch[None, :] == jnp.arange(num_graphs)[:, None]).astype(jnp.float32)
    counts = onehot.sum(axis=1, keepdims=True)
    return onehot / jnp.maximum(counts, 1.0)


def init_bn(dim):
    return (jnp.ones((dim,), jnp.float32),   # gamma
            jnp.zeros((dim,), jnp.float32),  # beta
            jnp.zeros((dim,), jnp.float32),  # running_mean
            jnp.ones((dim,), jnp.float32))   # running_var


def init_linear(key, d_in, d_out):
    kw, kb = jax.random.split(key)
    bound = 1.0 / jnp.sqrt(d_in)
    w = jax.random.uniform(kw, (d_in, d_out), jnp.float32, -bound, bound)
    b = jax.random.uniform(kb, (d_out,), jnp.float32, -bound, bound)
    return w, b


class GCNParams:
    def __init__(self, key, in_dim, conv_out_dim, pre_fc_dim, post_fc_dim, num_layers):
        keys = jax.random.split(key, 16)
        ki = iter(keys)
        self.in_dim = in_dim
        self.conv_out_dim = conv_out_dim

        self.pre_fc, self.pre_fc_bns = [], []
        last = in_dim
        for d in pre_fc_dim:
            self.pre_fc.append(init_linear(next(ki), last, d))
            self.pre_fc_bns.append(init_bn(d))
            last = d
        conv_in = pre_fc_dim[-1] if pre_fc_dim else in_dim

        self.convs, self.bns = [], []
        last = conv_in
        for _ in range(num_layers):
            self.convs.append(init_linear(next(ki), last, conv_out_dim))
            self.bns.append(init_bn(conv_out_dim))
            last = conv_out_dim

        self.post_fc, self.post_fc_bns = [], []
        last = conv_out_dim
        for d in post_fc_dim:
            self.post_fc.append(init_linear(next(ki), last, d))
            self.post_fc_bns.append(init_bn(d))
            last = d
        out_dim = post_fc_dim[-1] if post_fc_dim else conv_out_dim
        self.out_lin = init_linear(next(ki), out_dim, 1)


def fold_params(params):
    """Fold BN(eval)+bias into weights ONCE and pad all dims to 128 lanes."""
    def fold(w, b, bn, pad_in, pad_out):
        if bn is None:
            scale, shift = jnp.ones_like(b), b
        else:
            gamma, beta, mean, var = bn
            scale = gamma / jnp.sqrt(var + BN_EPS)
            shift = (b - mean) * scale + beta
        wf = _pad2(w * scale[None, :], pad_in, pad_out).astype(jnp.bfloat16)
        sf = jnp.pad(shift, (0, pad_out - shift.shape[0]))
        return wf, sf.reshape(1, pad_out).astype(jnp.float32)

    pad = lambda d: _round_up(d, LANE)
    fp = {"in_pad": pad(params.in_dim), "pre_fc": [], "convs": [], "post_fc": []}
    for (w, b), bn in zip(params.pre_fc, params.pre_fc_bns):
        fp["pre_fc"].append(fold(w, b, bn, pad(w.shape[0]), pad(w.shape[1])))
    for (w, b), bn in zip(params.convs, params.bns):
        fp["convs"].append(fold(w, b, bn, pad(w.shape[0]), pad(w.shape[1])))
    for (w, b), bn in zip(params.post_fc, params.post_fc_bns):
        fp["post_fc"].append(fold(w, b, bn, pad(w.shape[0]), pad(w.shape[1])))
    w, b = params.out_lin
    fp["head"] = fold(w, b, None, pad(w.shape[0]), pad(1))
    return fp


def make_ring_batch(num_graphs, nodes_per_graph):
    n = num_graphs * nodes_per_graph
    idx = jnp.arange(n, dtype=jnp.int32)
    base = (idx // nodes_per_graph) * nodes_per_graph
    nxt = base + (idx - base + 1) % nodes_per_graph
    src = jnp.concatenate([idx, nxt])
    dst = jnp.concatenate([nxt, idx])
    edge_index = jnp.stack([src, dst])
    edge_weight = jnp.ones((2 * n,), jnp.float32)
    batch = idx // nodes_per_graph
    return edge_index, edge_weight, batch


# ============================================================================
if __name__ == "__main__":
    key = jax.random.PRNGKey(0)
    in_dim, conv_out_dim = 16, 32
    pre_fc_dim, post_fc_dim, num_layers = [32], [32], 2

    kp, kx1, kx2 = jax.random.split(key, 3)
    params = GCNParams(kp, in_dim, conv_out_dim, pre_fc_dim, post_fc_dim, num_layers)
    fp = fold_params(params)

    # ---- small batch: 2 ring graphs x 32 nodes -> single fused kernel ----
    n_small, g_small = 64, 2
    x1 = jax.random.normal(kx1, (n_small, in_dim), jnp.float32)
    ei1, ew1, b1 = make_ring_batch(g_small, n_small // g_small)

    out_small = jax.block_until_ready(
        gcn_forward(fp, x1, ei1, ew1, b1, g_small))      # dispatches to fused
    assert out_small.shape == (g_small, 1)
    assert bool(jnp.all(jnp.isfinite(out_small)))

    # consistency check: the tiled path computes the same thing
    out_small_tiled = jax.block_until_ready(
        gcn_forward_tiled(fp, x1, ei1, ew1, b1, g_small))
    assert bool(jnp.allclose(out_small, out_small_tiled, rtol=5e-2, atol=5e-2))

    # ---- larger batch exercises the tiled / multi-K / 512-wide-tile path ----
    n_big, g_big = 1024, 4
    x2 = jax.random.normal(kx2, (n_big, in_dim), jnp.float32)
    ei2, ew2, b2 = make_ring_batch(g_big, n_big // g_big)
    out_big_tiled = jax.block_until_ready(
        gcn_forward_tiled(fp, x2, ei2, ew2, b2, g_big))
    assert out_big_tiled.shape == (g_big, 1)
    assert bool(jnp.all(jnp.isfinite(out_big_tiled)))

    # cross-check fused vs tiled at 1024 nodes (still well inside VMEM budget)
    out_big = jax.block_until_ready(
        gcn_forward(fp, x2, ei2, ew2, b2, g_big))
    assert bool(jnp.allclose(out_big, out_big_tiled, rtol=5e-2, atol=5e-2))

    print("KERNEL_OK")
</pallas_src>

<mosaic_0001>
module attributes {stable_mosaic.version = 11 : i64} {
  func.func @kernel(%arg0: memref<128x128xbf16, #tpu.memory_space<vmem>>, %arg1: memref<16x128xbf16, #tpu.memory_space<vmem>>, %arg2: memref<128x128xbf16, #tpu.memory_space<vmem>>, %arg3: memref<128x128xbf16, #tpu.memory_space<vmem>>, %arg4: memref<1x128xf32, #tpu.memory_space<vmem>>, %arg5: memref<128x128xbf16, #tpu.memory_space<vmem>>, %arg6: memref<1x128xf32, #tpu.memory_space<vmem>>, %arg7: memref<128x128xbf16, #tpu.memory_space<vmem>>, %arg8: memref<1x128xf32, #tpu.memory_space<vmem>>, %arg9: memref<128x128xbf16, #tpu.memory_space<vmem>>, %arg10: memref<1x128xf32, #tpu.memory_space<vmem>>, %arg11: memref<128x128xbf16, #tpu.memory_space<vmem>>, %arg12: memref<1x128xf32, #tpu.memory_space<vmem>>, %arg13: memref<16x128xf32, #tpu.memory_space<vmem>>) attributes {dimension_semantics = [], scalar_prefetch = 0 : i64, scratch_operands = 0 : i64, tpu.core_type = #tpu.core_type<tc>} {
    %c0 = arith.constant 0 : index
    %c0_0 = arith.constant 0 : index
    %0 = vector.load %arg2[%c0, %c0_0] : memref<128x128xbf16, #tpu.memory_space<vmem>>, vector<128x128xbf16>
    %c0_1 = arith.constant 0 : index
    %c0_2 = arith.constant 0 : index
    %1 = vector.load %arg0[%c0_1, %c0_2] : memref<128x128xbf16, #tpu.memory_space<vmem>>, vector<128x128xbf16>
    %c0_3 = arith.constant 0 : index
    %c0_4 = arith.constant 0 : index
    %2 = vector.load %arg3[%c0_3, %c0_4] : memref<128x128xbf16, #tpu.memory_space<vmem>>, vector<128x128xbf16>
    %c0_5 = arith.constant 0 : index
    %c0_6 = arith.constant 0 : index
    %3 = vector.load %arg4[%c0_5, %c0_6] : memref<1x128xf32, #tpu.memory_space<vmem>>, vector<1x128xf32>
    %cst = arith.constant dense<0.000000e+00> : vector<128x128xf32>
    %4 = tpu.matmul %0, %2, %cst {dimension_numbers = #tpu.dot_dimension_numbers<[1], [0], [0], [1], [0, 0, 1, 1], [], []>} : vector<128x128xbf16>, vector<128x128xbf16>, vector<128x128xf32> -> vector<128x128xf32>
    %5 = vector.broadcast %3 : vector<1x128xf32> to vector<128x128xf32>
    %6 = arith.addf %4, %5 : vector<128x128xf32>
    %cst_7 = arith.constant 0.000000e+00 : f32
    %7 = vector.broadcast %cst_7 : f32 to vector<128x128xf32>
    %8 = arith.maximumf %6, %7 : vector<128x128xf32>
    %9 = arith.truncf %8 : vector<128x128xf32> to vector<128x128xbf16>
    %c0_8 = arith.constant 0 : index
    %c0_9 = arith.constant 0 : index
    %10 = vector.load %arg5[%c0_8, %c0_9] : memref<128x128xbf16, #tpu.memory_space<vmem>>, vector<128x128xbf16>
    %c0_10 = arith.constant 0 : index
    %c0_11 = arith.constant 0 : index
    %11 = vector.load %arg6[%c0_10, %c0_11] : memref<1x128xf32, #tpu.memory_space<vmem>>, vector<1x128xf32>
    %cst_12 = arith.constant dense<0.000000e+00> : vector<128x128xf32>
    %12 = tpu.matmul %9, %10, %cst_12 {dimension_numbers = #tpu.dot_dimension_numbers<[1], [0], [0], [1], [0, 0, 1, 1], [], []>} : vector<128x128xbf16>, vector<128x128xbf16>, vector<128x128xf32> -> vector<128x128xf32>
    %13 = arith.truncf %12 : vector<128x128xf32> to vector<128x128xbf16>
    %cst_13 = arith.constant dense<0.000000e+00> : vector<128x128xf32>
    %14 = tpu.matmul %1, %13, %cst_13 {dimension_numbers = #tpu.dot_dimension_numbers<[1], [0], [0], [1], [0, 0, 1, 1], [], []>} : vector<128x128xbf16>, vector<128x128xbf16>, vector<128x128xf32> -> vector<128x128xf32>
    %15 = vector.broadcast %11 : vector<1x128xf32> to vector<128x128xf32>
    %16 = arith.addf %14, %15 : vector<128x128xf32>
    %cst_14 = arith.constant 0.000000e+00 : f32
    %17 = vector.broadcast %cst_14 : f32 to vector<128x128xf32>
    %18 = arith.maximumf %16, %17 : vector<128x128xf32>
    %19 = arith.truncf %18 : vector<128x128xf32> to vector<128x128xbf16>
    %c0_15 = arith.constant 0 : index
    %c0_16 = arith.constant 0 : index
    %20 = vector.load %arg7[%c0_15, %c0_16] : memref<128x128xbf16, #tpu.memory_space<vmem>>, vector<128x128xbf16>
    %c0_17 = arith.constant 0 : index
    %c0_18 = arith.constant 0 : index
    %21 = vector.load %arg8[%c0_17, %c0_18] : memref<1x128xf32, #tpu.memory_space<vmem>>, vector<1x128xf32>
    %cst_19 = arith.constant dense<0.000000e+00> : vector<128x128xf32>
    %22 = tpu.matmul %19, %20, %cst_19 {dimension_numbers = #tpu.dot_dimension_numbers<[1], [0], [0], [1], [0, 0, 1, 1], [], []>} : vector<128x128xbf16>, vector<128x128xbf16>, vector<128x128xf32> -> vector<128x128xf32>
    %23 = arith.truncf %22 : vector<128x128xf32> to vector<128x128xbf16>
    %cst_20 = arith.constant dense<0.000000e+00> : vector<128x128xf32>
    %24 = tpu.matmul %1, %23, %cst_20 {dimension_numbers = #tpu.dot_dimension_numbers<[1], [0], [0], [1], [0, 0, 1, 1], [], []>} : vector<128x128xbf16>, vector<128x128xbf16>, vector<128x128xf32> -> vector<128x128xf32>
    %25 = vector.broadcast %21 : vector<1x128xf32> to vector<128x128xf32>
    %26 = arith.addf %24, %25 : vector<128x128xf32>
    %cst_21 = arith.constant 0.000000e+00 : f32
    %27 = vector.broadcast %cst_21 : f32 to vector<128x128xf32>
    %28 = arith.maximumf %26, %27 : vector<128x128xf32>
    %29 = arith.truncf %28 : vector<128x128xf32> to vector<128x128xbf16>
    %c0_22 = arith.constant 0 : index
    %c0_23 = arith.constant 0 : index
    %30 = vector.load %arg1[%c0_22, %c0_23] : memref<16x128xbf16, #tpu.memory_space<vmem>>, vector<16x128xbf16>
    %cst_24 = arith.constant dense<0.000000e+00> : vector<16x128xf32>
    %31 = tpu.matmul %30, %29, %cst_24 {dimension_numbers = #tpu.dot_dimension_numbers<[1], [0], [0], [1], [0, 0, 1, 1], [], []>} : vector<16x128xbf16>, vector<128x128xbf16>, vector<16x128xf32> -> vector<16x128xf32>
    %32 = arith.truncf %31 : vector<16x128xf32> to vector<16x128xbf16>
    %c0_25 = arith.constant 0 : index
    %c0_26 = arith.constant 0 : index
    %33 = vector.load %arg9[%c0_25, %c0_26] : memref<128x128xbf16, #tpu.memory_space<vmem>>, vector<128x128xbf16>
    %c0_27 = arith.constant 0 : index
    %c0_28 = arith.constant 0 : index
    %34 = vector.load %arg10[%c0_27, %c0_28] : memref<1x128xf32, #tpu.memory_space<vmem>>, vector<1x128xf32>
    %cst_29 = arith.constant dense<0.000000e+00> : vector<16x128xf32>
    %35 = tpu.matmul %32, %33, %cst_29 {dimension_numbers = #tpu.dot_dimension_numbers<[1], [0], [0], [1], [0, 0, 1, 1], [], []>} : vector<16x128xbf16>, vector<128x128xbf16>, vector<16x128xf32> -> vector<16x128xf32>
    %36 = vector.broadcast %34 : vector<1x128xf32> to vector<16x128xf32>
    %37 = arith.addf %35, %36 : vector<16x128xf32>
    %cst_30 = arith.constant 0.000000e+00 : f32
    %38 = vector.broadcast %cst_30 : f32 to vector<16x128xf32>
    %39 = arith.maximumf %37, %38 : vector<16x128xf32>
    %40 = arith.truncf %39 : vector<16x128xf32> to vector<16x128xbf16>
    %c0_31 = arith.constant 0 : index
    %c0_32 = arith.constant 0 : index
    %41 = vector.load %arg11[%c0_31, %c0_32] : memref<128x128xbf16, #tpu.memory_space<vmem>>, vector<128x128xbf16>
    %c0_33 = arith.constant 0 : index
    %c0_34 = arith.constant 0 : index
    %42 = vector.load %arg12[%c0_33, %c0_34] : memref<1x128xf32, #tpu.memory_space<vmem>>, vector<1x128xf32>
    %cst_35 = arith.constant dense<0.000000e+00> : vector<16x128xf32>
    %43 = tpu.matmul %40, %41, %cst_35 {dimension_numbers = #tpu.dot_dimension_numbers<[1], [0], [0], [1], [0, 0, 1, 1], [], []>} : vector<16x128xbf16>, vector<128x128xbf16>, vector<16x128xf32> -> vector<16x128xf32>
    %44 = vector.broadcast %42 : vector<1x128xf32> to vector<16x128xf32>
    %45 = arith.addf %43, %44 : vector<16x128xf32>
    %c0_36 = arith.constant 0 : index
    %c0_37 = arith.constant 0 : index
    %46 = vector.load %arg13[%c0_36, %c0_37] : memref<16x128xf32, #tpu.memory_space<vmem>>, vector<16x128xf32>
    tpu.vector_store %arg13[%c0_36, %c0_37], %45 {strides = array<i32>} : memref<16x128xf32, #tpu.memory_space<vmem>>, vector<16x128xf32>,
    return
  }
}

</mosaic_0001>

<bundles_post_ra>
// kernel: tpu_custom_call.1
= control target key start
LH: loop header
LB: loop body
LE: loop exit
PB: predicated region body
PF: predicated region fallthrough
CT: control target
= control target key end

     0   :  { %18 = vsyncpa [#allocation3], 0  ;;  %s2362_s0 = inlined_call_operand.hbm [shape: bf16[128,128], index: 0, kind: input, shape index: {}]   ;;  %s2363_s1 = inlined_call_operand.hbm [shape: bf16[16,128], index: 1, kind: input, shape index: {}]   ;;  %s2364_s2 = inlined_call_operand.hbm [shape: bf16[128,128], index: 2, kind: input, shape index: {}]   ;;  %s2365_s3 = inlined_call_operand.hbm [shape: bf16[128,128], index: 3, kind: input, shape index: {}]   ;;  %s2366_s4 = inlined_call_operand.vmem [shape: f32[1,128], index: 4, kind: input, shape index: {}]   ;;  %s2367_s5 = inlined_call_operand.hbm [shape: bf16[128,128], index: 5, kind: input, shape index: {}]   ;;  %s2368_s6 = inlined_call_operand.vmem [shape: f32[1,128], index: 6, kind: input, shape index: {}]   ;;  %s2369_s7 = inlined_call_operand.hbm [shape: bf16[128,128], index: 7, kind: input, shape index: {}]   ;;  %s2370_s8 = inlined_call_operand.vmem [shape: f32[1,128], index: 8, kind: input, shape index: {}]   ;;  %s2371_s9 = inlined_call_operand.hbm [shape: bf16[128,128], index: 9, kind: input, shape index: {}]   ;;  %s2372_s10 = inlined_call_operand.vmem [shape: f32[1,128], index: 10, kind: input, shape index: {}]   ;;  %s2373_s11 = inlined_call_operand.hbm [shape: bf16[128,128], index: 11, kind: input, shape index: {}]   ;;  %s2374_s12 = inlined_call_operand.vmem [shape: f32[1,128], index: 12, kind: input, shape index: {}]   ;;  %s2375_s13 = inlined_call_operand.hbm [shape: f32[16,128], index: 13, kind: output, shape index: {}]  }
   0x1   :  { %19 = vsyncpa [#allocation6], 0 }
   0x2   :  { %20 = vsyncpa [#allocation9], 0 }
   0x3   :  { %21 = vsyncpa [#allocation12], 0 }
   0x4   :  { %22 = vsyncpa [#allocation15], 0 }
   0x5   :  { %23 = vsyncpa [#allocation4], 0  ;;  %s2040_s25 = smov [#allocation5]   ;;  %s2041_s27 = smov [#allocation8]  }
   0x6   :  { %s41_s26 = sshll.u32 %s2040_s25, 4  ;;  %s65_s28 = sshll.u32 %s2041_s27, 4  ;;  %s42_s26 = int_to_ptr.vmem [resolvable:$true] %s41_s26  ;;  %s2125_s28 = int_to_ptr.vmem [resolvable:$true] %s65_s28 }
   0x7   :  { %s1830_s14 = scalar_lea.hbm %s2363_s1, 128 }
   0x8   :  { %p1831_p0 = scmp.ne.s32.totalorder %s2363_s1, %s1830_s14  ;;  %p1834_p1 = scmp.lt.u32.totalorder %s1830_s14, %s2363_s1 }
   0xa   :  { %p1836_p2 = pnand %p1834_p1, %p1831_p0 }
   0xc   :  { %1839 = shalt.err (!%p1836_p2)
}
   0xd   :  { %s1840_s19 = scalar_lea.vmem %s42_s26, 128  ;;  %p1845_p4 = scmp.lt.s32.totalorder %s42_s26, %s42_s26 }
   0xe   :  { %p1841_p3 = scmp.ne.s32.totalorder %s42_s26, %s1840_s19  ;;  %p1846_p5 = scmp.lt.s32.totalorder %s1840_s19, %s1840_s19 }
  0x10   :  { %p1847_p6 = por %p1846_p5, %p1845_p4 }
  0x12   :  { %p1848_p7 = pnand %p1847_p6, %p1841_p3 }
  0x14   :  { %1851 = shalt.err (!%p1848_p7)
}
  0x15   :  { %s2042_s20 = smov 64   ;;  %s2043_s21 = smov 4  }
  0x16   :  { %47 = dma.hbm_to_vmem [thread:$0]  %s2363_s1, 128, %s42_s26, [#allocation6], %s2042_s20, %s2042_s20, %s2043_s21  }
  0x17   :  { %s1852_s27 = scalar_lea.hbm %s2365_s3, 1024 }
  0x18   :  { %p1853_p8 = scmp.ne.s32.totalorder %s2365_s3, %s1852_s27  ;;  %p1856_p9 = scmp.lt.u32.totalorder %s1852_s27, %s2365_s3 }
  0x1a   :  { %p1858_p10 = pnand %p1856_p9, %p1853_p8 }
  0x1c   :  { %1861 = shalt.err (!%p1858_p10)
}
  0x1d   :  { %s1862_s16 = scalar_lea.vmem %s2125_s28, 1024  ;;  %p1867_p12 = scmp.lt.s32.totalorder %s2125_s28, %s2125_s28 }
  0x1e   :  { %p1863_p11 = scmp.ne.s32.totalorder %s2125_s28, %s1862_s16  ;;  %p1868_p13 = scmp.lt.s32.totalorder %s1862_s16, %s1862_s16 }
  0x20   :  { %p1869_p0 = por %p1868_p13, %p1867_p12 }
  0x22   :  { %p1870_p1 = pnand %p1869_p0, %p1863_p11 }
  0x24   :  { %1873 = shalt.err (!%p1870_p1)
}
  0x25   :  { %71 = dma.hbm_to_vmem [thread:$0]  %s2365_s3, 1024, %s2125_s28, [#allocation9], %s2042_s20, %s2042_s20, %s2043_s21  }
  0x26   :  { %s2044_s17 = smov [#allocation11]   ;;  %s2045_s19 = smov [#allocation2]  }
  0x27   :  { %s93_s18 = sshll.u32 %s2044_s17, 4  ;;  %s29_s22 = sshll.u32 %s2045_s19, 4  ;;  %s94_s18 = int_to_ptr.vmem [resolvable:$true] %s93_s18  ;;  %s2162_s22 = int_to_ptr.vmem [resolvable:$true] %s29_s22 }
  0x28   :  { %s1874_s25 = scalar_lea.hbm %s2369_s7, 1024 }
  0x29   :  { %p1875_p2 = scmp.ne.s32.totalorder %s2369_s7, %s1874_s25  ;;  %p1878_p3 = scmp.lt.u32.totalorder %s1874_s25, %s2369_s7 }
  0x2b   :  { %p1880_p4 = pnand %p1878_p3, %p1875_p2 }
  0x2d   :  { %1883 = shalt.err (!%p1880_p4)
}
  0x2e   :  { %s1884_s3 = scalar_lea.vmem %s94_s18, 1024  ;;  %p1889_p6 = scmp.lt.s32.totalorder %s94_s18, %s94_s18 }
  0x2f   :  { %p1885_p5 = scmp.ne.s32.totalorder %s94_s18, %s1884_s3  ;;  %p1890_p7 = scmp.lt.s32.totalorder %s1884_s3, %s1884_s3 }
  0x31   :  { %p1891_p8 = por %p1890_p7, %p1889_p6 }
  0x33   :  { %p1892_p9 = pnand %p1891_p8, %p1885_p5 }
  0x35   :  { %1895 = shalt.err (!%p1892_p9)
}
  0x36   :  { %99 = dma.hbm_to_vmem [thread:$0]  %s2369_s7, 1024, %s94_s18, [#allocation12], %s2042_s20, %s2042_s20, %s2043_s21  }
  0x37   :  { %s1896_s26 = scalar_lea.hbm %s2362_s0, 1024 }
  0x38   :  { %p1897_p10 = scmp.ne.s32.totalorder %s2362_s0, %s1896_s26  ;;  %p1900_p11 = scmp.lt.u32.totalorder %s1896_s26, %s2362_s0 }
  0x3a   :  { %p1902_p12 = pnand %p1900_p11, %p1897_p10 }
  0x3c   :  { %1905 = shalt.err (!%p1902_p12)
}
  0x3d   :  { %s1906_s25 = scalar_lea.vmem %s2162_s22, 1024  ;;  %p1911_p0 = scmp.lt.s32.totalorder %s2162_s22, %s2162_s22 }
  0x3e   :  { %p1907_p13 = scmp.ne.s32.totalorder %s2162_s22, %s1906_s25  ;;  %p1912_p1 = scmp.lt.s32.totalorder %s1906_s25, %s1906_s25 }
  0x40   :  { %p1913_p2 = por %p1912_p1, %p1911_p0 }
  0x42   :  { %p1914_p3 = pnand %p1913_p2, %p1907_p13 }
  0x44   :  { %1917 = shalt.err (!%p1914_p3)
}
  0x45   :  { %35 = dma.hbm_to_vmem [thread:$0]  %s2362_s0, 1024, %s2162_s22, [#allocation3], %s2042_s20, %s2042_s20, %s2043_s21  }
  0x46   :  { %s2046_s27 = smov [#allocation7]   ;;  %s2047_s30 = smov [#allocation10]  }
  0x47   :  { %s53_s29 = sshll.u32 %s2046_s27, 4  ;;  %s79_s14 = sshll.u32 %s2047_s30, 4  ;;  %s54_s29 = int_to_ptr.vmem [resolvable:$true] %s53_s29  ;;  %s2199_s14 = int_to_ptr.vmem [resolvable:$true] %s79_s14 }
  0x48   :  { %s1918_s15 = scalar_lea.hbm %s2364_s2, 1024 }
  0x49   :  { %p1919_p4 = scmp.ne.s32.totalorder %s2364_s2, %s1918_s15  ;;  %p1922_p5 = scmp.lt.u32.totalorder %s1918_s15, %s2364_s2 }
  0x4b   :  { %p1924_p6 = pnand %p1922_p5, %p1919_p4 }
  0x4d   :  { %1927 = shalt.err (!%p1924_p6)
}
  0x4e   :  { %s1928_s0 = scalar_lea.vmem %s54_s29, 1024  ;;  %p1933_p8 = scmp.lt.s32.totalorder %s54_s29, %s54_s29 }
  0x4f   :  { %p1929_p7 = scmp.ne.s32.totalorder %s54_s29, %s1928_s0  ;;  %p1934_p9 = scmp.lt.s32.totalorder %s1928_s0, %s1928_s0 }
  0x51   :  { %p1935_p10 = por %p1934_p9, %p1933_p8 }
  0x53   :  { %p1936_p11 = pnand %p1935_p10, %p1929_p7 }
  0x55   :  { %1939 = shalt.err (!%p1936_p11)
}
  0x56   :  { %59 = dma.hbm_to_vmem [thread:$0]  %s2364_s2, 1024, %s54_s29, [#allocation6], %s2042_s20, %s2042_s20, %s2043_s21  }
  0x57   :  { %s1940_s25 = scalar_lea.hbm %s2367_s5, 1024 }
  0x58   :  { %p1941_p12 = scmp.ne.s32.totalorder %s2367_s5, %s1940_s25  ;;  %p1944_p13 = scmp.lt.u32.totalorder %s1940_s25, %s2367_s5 }
  0x5a   :  { %p1946_p0 = pnand %p1944_p13, %p1941_p12 }
  0x5c   :  { %1949 = shalt.err (!%p1946_p0)
}
  0x5d   :  { %s1950_s3 = scalar_lea.vmem %s2199_s14, 1024  ;;  %p1955_p2 = scmp.lt.s32.totalorder %s2199_s14, %s2199_s14 }
  0x5e   :  { %p1951_p1 = scmp.ne.s32.totalorder %s2199_s14, %s1950_s3  ;;  %p1956_p3 = scmp.lt.s32.totalorder %s1950_s3, %s1950_s3 }
  0x60   :  { %p1957_p4 = por %p1956_p3, %p1955_p2 }
  0x62   :  { %p1958_p5 = pnand %p1957_p4, %p1951_p1 }
  0x64   :  { %1961 = shalt.err (!%p1958_p5)
}
  0x65   :  { %85 = dma.hbm_to_vmem [thread:$0]  %s2367_s5, 1024, %s2199_s14, [#allocation9], %s2042_s20, %s2042_s20, %s2043_s21  }
  0x66   :  { %s2048_s28 = smov [#allocation13]   ;;  %s2049_s16 = smov [#allocation14]  }
  0x67   :  { %s107_s15 = sshll.u32 %s2048_s28, 4  ;;  %s121_s1 = sshll.u32 %s2049_s16, 4  ;;  %s108_s15 = int_to_ptr.vmem [resolvable:$true] %s107_s15  ;;  %s2236_s1 = int_to_ptr.vmem [resolvable:$true] %s121_s1 }
  0x68   :  { %s1962_s0 = scalar_lea.hbm %s2371_s9, 1024 }
  0x69   :  { %p1963_p6 = scmp.ne.s32.totalorder %s2371_s9, %s1962_s0  ;;  %p1966_p7 = scmp.lt.u32.totalorder %s1962_s0, %s2371_s9 }
  0x6b   :  { %p1968_p8 = pnand %p1966_p7, %p1963_p6 }
  0x6d   :  { %1971 = shalt.err (!%p1968_p8)
}
  0x6e   :  { %s1972_s5 = scalar_lea.vmem %s108_s15, 1024  ;;  %p1977_p10 = scmp.lt.s32.totalorder %s108_s15, %s108_s15 }
  0x6f   :  { %p1973_p9 = scmp.ne.s32.totalorder %s108_s15, %s1972_s5  ;;  %p1978_p11 = scmp.lt.s32.totalorder %s1972_s5, %s1972_s5 }
  0x71   :  { %p1979_p12 = por %p1978_p11, %p1977_p10 }
  0x73   :  { %p1980_p13 = pnand %p1979_p12, %p1973_p9 }
  0x75   :  { %1983 = shalt.err (!%p1980_p13)
}
  0x76   :  { %113 = dma.hbm_to_vmem [thread:$0]  %s2371_s9, 1024, %s108_s15, [#allocation12], %s2042_s20, %s2042_s20, %s2043_s21  }
  0x77   :  { %s1984_s27 = scalar_lea.hbm %s2373_s11, 1024 }
  0x78   :  { %p1985_p0 = scmp.ne.s32.totalorder %s2373_s11, %s1984_s27  ;;  %p1988_p1 = scmp.lt.u32.totalorder %s1984_s27, %s2373_s11 }
  0x7a   :  { %p1990_p2 = pnand %p1988_p1, %p1985_p0 }
  0x7c   :  { %1993 = shalt.err (!%p1990_p2)
}
  0x7d   :  { %s1994_s28 = scalar_lea.vmem %s2236_s1, 1024  ;;  %p1999_p4 = scmp.lt.s32.totalorder %s2236_s1, %s2236_s1 }
  0x7e   :  { %p1995_p3 = scmp.ne.s32.totalorder %s2236_s1, %s1994_s28  ;;  %p2000_p5 = scmp.lt.s32.totalorder %s1994_s28, %s1994_s28 }
  0x80   :  { %p2001_p6 = por %p2000_p5, %p1999_p4 }
  0x82   :  { %p2002_p7 = pnand %p2001_p6, %p1995_p3 }
  0x84   :  { %2005 = shalt.err (!%p2002_p7)
}
  0x85   :  { %127 = dma.hbm_to_vmem [thread:$0]  %s2373_s11, 1024, %s2236_s1, [#allocation15], %s2042_s20, %s2042_s20, %s2043_s21  }
  0x86   :  { %2028 = dma.done.wait [#allocation3], 1024  }
  0x87   :  { %2029 = vsyncadd [#allocation3], 4294966272 }
  0x88   :  { %2030 = dma.done.wait [#allocation6], 1152  }
  0x89   :  { %2031 = vsyncadd [#allocation6], 4294966144 }
  0x8a   :  { %2032 = dma.done.wait [#allocation9], 2048  }
  0x8b   :  { %2033 = vsyncadd [#allocation9], 4294965248 }
  0x8c   :  { %2034 = dma.done.wait [#allocation12], 2048  }
  0x8d   :  { %2035 = vsyncadd [#allocation12], 4294965248 }
  0x8e   :  { %2036 = dma.done.wait [#allocation15], 1024  }
  0x8f   :  { %2037 = vsyncadd [#allocation15], 4294966272  ;;  %v1773_v0 = vld [vmem:[#allocation8] sm:$0xff]   ;;  %v1774_v1 = vld [vmem:[#allocation8 + $0x8] sm:$0xff]   ;;  %vm2051_vm0 = vmmov 0   ;;  %s2052_s0 = smov [#allocation16]  }
  0x90   :  { %1538 = vmatprep.subr.bf16.mxu0 %v1773_v0  ;;  %v1775_v2 = vld [vmem:[#allocation8 + $0x10] sm:$0xff]   ;;  %v1776_v3 = vld [vmem:[#allocation8 + $0x18] sm:$0xff]   ;;  %v1781_v4 = vld [vmem:[#allocation7] sm:$0xff]   ;;  %s1353_s22 = sshll.u32 %s2052_s0, 4  ;;  %s1354_s22 = int_to_ptr.vmem [resolvable:$true] %s1353_s22 }
  0x91   :  { %1539 = vmatpush3.bf16.msra.mxu0 %v1773_v0  ;;  %1554 = vmatprep.mubr.bf16.mxu0 %v1781_v4  ;;  %v1777_v5 = vld [vmem:[#allocation8 + $0x20] sm:$0xff]   ;;  %v1778_v6 = vld [vmem:[#allocation8 + $0x28] sm:$0xff]   ;;  %v1779_v9 = vld [vmem:[#allocation8 + $0x30] sm:$0xff]   ;;  %p2011_p9 = scmp.lt.s32.totalorder %s1354_s22, %s1354_s22 }
  0x92   :  { %1540 = vmatprep.subr.bf16.mxu0 %v1774_v1  ;;  %v1789_v7 = vld [vmem:[#allocation10] sm:$0xff]   ;;  %v1790_v8 = vld [vmem:[#allocation10 + $0x8] sm:$0xff]   ;;  %v1791_v10 = vld [vmem:[#allocation10 + $0x10] sm:$0xff]  }
  0x93   :  { %1570 = vmatprep.subr.bf16.mxu1 %v1789_v7  ;;  %v1780_v11 = vld [vmem:[#allocation8 + $0x38] sm:$0xff]   ;;  %v1793_v13 = vld [vmem:[#allocation10 + $0x20] sm:$0xff]   ;;  %v1782_v14 = vld [vmem:[#allocation7 + $0x8] sm:$0xff]  }
  0x94   :  { %1571 = vmatpush3.bf16.msra.mxu1 %v1789_v7  ;;  %v1792_v12 = vld [vmem:[#allocation10 + $0x18] sm:$0xff]   ;;  %v1783_v15 = vld [vmem:[#allocation7 + $0x10] sm:$0xff]   ;;  %v1794_v16 = vld [vmem:[#allocation10 + $0x28] sm:$0xff]  }
  0x95   :  { %1541 = vmatpush3.bf16.msra.mxu0 %v1774_v1  ;;  %1572 = vmatprep.subr.bf16.mxu1 %v1790_v8  ;;  %v1784_v17 = vld [vmem:[#allocation7 + $0x18] sm:$0xff]   ;;  %v1785_v18 = vld [vmem:[#allocation7 + $0x20] sm:$0xff]   ;;  %v1786_v19 = vld [vmem:[#allocation7 + $0x28] sm:$0xff]  }
  0x96   :  { %1542 = vmatprep.subr.bf16.mxu0 %v1775_v2  ;;  %v1787_v20 = vld [vmem:[#allocation7 + $0x30] sm:$0xff]   ;;  %v1788_v21 = vld [vmem:[#allocation7 + $0x38] sm:$0xff]  }
  0x97   :  { %v1795_v22 = vld [vmem:[#allocation10 + $0x30] sm:$0xff]   ;;  %v1796_v23 = vld [vmem:[#allocation10 + $0x38] sm:$0xff]  }
  0x98   :  { %1573 = vmatpush3.bf16.msra.mxu1 %v1790_v8  ;;  %v1369_v24 = vld [vmem:[%s2366_s4] ss:$0 sm:$0xff] }
  0x99   :  { %1543 = vmatpush3.bf16.msra.mxu0 %v1775_v2  ;;  %1574 = vmatprep.subr.bf16.mxu1 %v1791_v10 }
  0x9a   :  { %1544 = vmatprep.subr.bf16.mxu0 %v1776_v3 }
  0x9c   :  { %1575 = vmatpush3.bf16.msra.mxu1 %v1791_v10 }
  0x9d   :  { %1545 = vmatpush3.bf16.msra.mxu0 %v1776_v3  ;;  %1576 = vmatprep.subr.bf16.mxu1 %v1792_v12 }
  0x9e   :  { %1546 = vmatprep.subr.bf16.mxu0 %v1777_v5 }
  0xa0   :  { %1577 = vmatpush3.bf16.msra.mxu1 %v1792_v12 }
  0xa1   :  { %1547 = vmatpush3.bf16.msra.mxu0 %v1777_v5  ;;  %1578 = vmatprep.subr.bf16.mxu1 %v1793_v13 }
  0xa2   :  { %1548 = vmatprep.subr.bf16.mxu0 %v1778_v6 }
  0xa4   :  { %1579 = vmatpush3.bf16.msra.mxu1 %v1793_v13 }
  0xa5   :  { %1549 = vmatpush3.bf16.msra.mxu0 %v1778_v6  ;;  %1580 = vmatprep.subr.bf16.mxu1 %v1794_v16 }
  0xa6   :  { %1550 = vmatprep.subr.bf16.mxu0 %v1779_v9 }
  0xa8   :  { %1581 = vmatpush3.bf16.msra.mxu1 %v1794_v16 }
  0xa9   :  { %1551 = vmatpush3.bf16.msra.mxu0 %v1779_v9  ;;  %1582 = vmatprep.subr.bf16.mxu1 %v1795_v22 }
  0xaa   :  { %1552 = vmatprep.subr.bf16.mxu0 %v1780_v11 }
  0xac   :  { %1583 = vmatpush3.bf16.msra.mxu1 %v1795_v22  ;;  %v1809_v22 = vld [vmem:[#allocation11 + $0x20] sm:$0xff]  }
  0xad   :  { %1553 = vmatpush3.bf16.msra.mxu0 %v1780_v11  ;;  %1584 = vmatprep.subr.bf16.mxu1 %v1796_v23 }
  0xb0   :  { %1555 = vmatmul.mubr.bf16.vlgmr.msra.gmra.mrb[0].mxu0 %v1782_v14  ;;  %1585 = vmatpush3.bf16.msra.mxu1 %v1796_v23  ;;  %v1810_v23 = vld [vmem:[#allocation11 + $0x28] sm:$0xff]  }
  0xb1   :  { %1558 = vmatprep.mubr.bf16.mxu0 %v1783_v15 }
  0xb8   :  { %1559 = vmatmul.mubr.bf16.gmra.mrb[4].mxu0 %v1784_v17  ;;  %v2276_v17 = vld [vmem:[#allocation2] sm:$0xff]  }
  0xb9   :  { %1562 = vmatprep.mubr.bf16.mxu0 %v1785_v18  ;;  %v1805_v18 = vld [vmem:[#allocation11] sm:$0xff]  }
  0xba   :  { %1634 = vmatprep.subr.bf16.mxu1 %v1805_v18 }
  0xc0   :  { %1563 = vmatmul.mubr.bf16.gmra.mrb[8].mxu0 %v1786_v19  ;;  %v1806_v19 = vld [vmem:[#allocation11 + $0x8] sm:$0xff]  }
  0xc1   :  { %1566 = vmatprep.mubr.bf16.mxu0 %v1787_v20  ;;  %v1807_v20 = vld [vmem:[#allocation11 + $0x10] sm:$0xff]  }
  0xc8   :  { %1567 = vmatmul.mubr.bf16.gmra.mrb[12].mxu0 %v1788_v21  ;;  %v1808_v21 = vld [vmem:[#allocation11 + $0x18] sm:$0xff]  }
  0xc9   :  { %1618 = vmatprep.mubr.bf16.mxu0 %v2276_v17 }
 0x183   :  { %v1556_v25 = vpop.f32.mrb[0].mxu0 }
 0x184   :  { %v349_v26 = vadd.f32 %v1556_v25, %v1369_v24  ;;  %v340_v27 = vpop.f32.mrb[1].mxu0 }
 0x185   :  { %v341_v28 = vadd.f32 %v1369_v24, %v340_v27  ;;  %v1557_v29 = vpop.f32.mrb[2].mxu0 }
 0x186   :  { %v352_v30 = vadd.f32 %v1557_v29, %v1369_v24  ;;  %v343_v31 = vpop.f32.mrb[3].mxu0  ;;  %v405_v33 = vmax.f32 %v349_v26, 0.0 }
 0x187   :  { %v344_v32 = vadd.f32 %v1369_v24, %v343_v31  ;;  %v403_v35 = vmax.f32 %v341_v28, 0.0 }
 0x188   :  { %v406_v34 = vmax.f32 %v352_v30, 0.0 }
 0x189   :  { %v404_v36 = vmax.f32 %v344_v32, 0.0 }
 0x18a   :  { %v420_v37 = vpack.c.bf16 %v406_v34, %v405_v33 }
 0x18b   :  { %v1560_v38 = vpop.f32.mrb[4].mxu0  ;;  %v419_v39 = vpack.c.bf16 %v404_v36, %v403_v35 }
 0x18c   :  { %v365_v40 = vadd.f32 %v1560_v38, %v1369_v24  ;;  %v356_v41 = vpop.f32.mrb[5].mxu0 }
 0x18d   :  { %v357_v42 = vadd.f32 %v1369_v24, %v356_v41  ;;  %v1561_v43 = vpop.f32.mrb[6].mxu0  ;;  %1586 = vmatprep.mubr.bf16.mxu1 %v419_v39 }
 0x18e   :  { %v368_v44 = vadd.f32 %v1561_v43, %v1369_v24  ;;  %v359_v45 = vpop.f32.mrb[7].mxu0  ;;  %1587 = vmatmul.mubr.bf16.vlgmr.msra.gmra.mrb[0].mxu1 %v420_v37  ;;  %v409_v47 = vmax.f32 %v365_v40, 0.0 }
 0x18f   :  { %v360_v46 = vadd.f32 %v1369_v24, %v359_v45  ;;  %v407_v49 = vmax.f32 %v357_v42, 0.0  ;;  %1635 = vmatpush3.bf16.msra.mxu1 %v1805_v18 }
 0x190   :  { %v410_v48 = vmax.f32 %v368_v44, 0.0  ;;  %1636 = vmatprep.subr.bf16.mxu1 %v1806_v19 }
 0x191   :  { %v408_v50 = vmax.f32 %v360_v46, 0.0 }
 0x192   :  { %v422_v51 = vpack.c.bf16 %v410_v48, %v409_v47  ;;  %v2279_v48 = vld [vmem:[#allocation2 + $0x8] sm:$0xff]  }
 0x193   :  { %v421_v52 = vpack.c.bf16 %v408_v50, %v407_v49  ;;  %v1564_v53 = vpop.f32.mrb[8].mxu0  ;;  %1637 = vmatpush3.bf16.msra.mxu1 %v1806_v19  ;;  %v2281_v49 = vld [vmem:[#allocation2 + $0x10] sm:$0xff]   ;;  %v2285_v50 = vld [vmem:[#allocation2 + $0x18] sm:$0xff]  }
 0x194   :  { %v381_v54 = vadd.f32 %v1564_v53, %v1369_v24  ;;  %v372_v55 = vpop.f32.mrb[9].mxu0  ;;  %1638 = vmatprep.subr.bf16.mxu1 %v1807_v20  ;;  %v2293_v53 = vld [vmem:[#allocation2 + $0x30] sm:$0xff]  }
 0x195   :  { %v373_v56 = vadd.f32 %v1369_v24, %v372_v55  ;;  %v1565_v57 = vpop.f32.mrb[10].mxu0  ;;  %1590 = vmatprep.mubr.bf16.mxu1 %v421_v52  ;;  %v2291_v52 = vld [vmem:[#allocation2 + $0x28] sm:$0xff]   ;;  %v1811_v55 = vld [vmem:[#allocation11 + $0x30] sm:$0xff]  }
 0x196   :  { %v384_v58 = vadd.f32 %v1565_v57, %v1369_v24  ;;  %v375_v59 = vpop.f32.mrb[11].mxu0  ;;  %1591 = vmatmul.mubr.bf16.gmra.mrb[4].mxu1 %v422_v51  ;;  %v413_v61 = vmax.f32 %v381_v54, 0.0  ;;  %v2287_v51 = vld [vmem:[#allocation2 + $0x20] sm:$0xff]   ;;  %v2297_v54 = vld [vmem:[#allocation2 + $0x38] sm:$0xff]  }
 0x197   :  { %v376_v60 = vadd.f32 %v1369_v24, %v375_v59  ;;  %v411_v63 = vmax.f32 %v373_v56, 0.0  ;;  %1639 = vmatpush3.bf16.msra.mxu1 %v1807_v20  ;;  %v1812_v56 = vld [vmem:[#allocation11 + $0x38] sm:$0xff]  }
 0x198   :  { %v414_v62 = vmax.f32 %v384_v58, 0.0  ;;  %1640 = vmatprep.subr.bf16.mxu1 %v1808_v21  ;;  %v1394_v57 = vld [vmem:[%s2368_s6] ss:$0 sm:$0xff] }
 0x199   :  { %v412_v0 = vmax.f32 %v376_v60, 0.0 }
 0x19a   :  { %v424_v1 = vpack.c.bf16 %v414_v62, %v413_v61 }
 0x19b   :  { %v423_v2 = vpack.c.bf16 %v412_v0, %v411_v63  ;;  %v1568_v3 = vpop.f32.mrb[12].mxu0  ;;  %1641 = vmatpush3.bf16.msra.mxu1 %v1808_v21 }
 0x19c   :  { %v397_v4 = vadd.f32 %v1568_v3, %v1369_v24  ;;  %v388_v5 = vpop.f32.mrb[13].mxu0  ;;  %1642 = vmatprep.subr.bf16.mxu1 %v1809_v22 }
 0x19d   :  { %v389_v6 = vadd.f32 %v1369_v24, %v388_v5  ;;  %v1569_v7 = vpop.f32.mrb[14].mxu0  ;;  %1594 = vmatprep.mubr.bf16.mxu1 %v423_v2 }
 0x19e   :  { %v400_v8 = vadd.f32 %v1569_v7, %v1369_v24  ;;  %v391_v9 = vpop.f32.mrb[15].mxu0  ;;  %1595 = vmatmul.mubr.bf16.gmra.mrb[8].mxu1 %v424_v1  ;;  %v417_v11 = vmax.f32 %v397_v4, 0.0 }
 0x19f   :  { %v392_v10 = vadd.f32 %v1369_v24, %v391_v9  ;;  %v415_v13 = vmax.f32 %v389_v6, 0.0  ;;  %1643 = vmatpush3.bf16.msra.mxu1 %v1809_v22 }
 0x1a0   :  { %v418_v12 = vmax.f32 %v400_v8, 0.0  ;;  %1644 = vmatprep.subr.bf16.mxu1 %v1810_v23 }
 0x1a1   :  { %v416_v14 = vmax.f32 %v392_v10, 0.0 }
 0x1a2   :  { %v426_v15 = vpack.c.bf16 %v418_v12, %v417_v11 }
 0x1a3   :  { %v425_v16 = vpack.c.bf16 %v416_v14, %v415_v13  ;;  %1645 = vmatpush3.bf16.msra.mxu1 %v1810_v23 }
 0x1a4   :  { %1646 = vmatprep.subr.bf16.mxu1 %v1811_v55 }
 0x1a5   :  { %1598 = vmatprep.mubr.bf16.mxu1 %v425_v16 }
 0x1a6   :  { %1599 = vmatmul.mubr.bf16.gmra.mrb[12].mxu1 %v426_v15 }
 0x1a7   :  { %1647 = vmatpush3.bf16.msra.mxu1 %v1811_v55 }
 0x1a8   :  { %1648 = vmatprep.subr.bf16.mxu1 %v1812_v56 }
 0x1ab   :  { %1649 = vmatpush3.bf16.msra.mxu1 %v1812_v56 }
 0x261   :  { %v1588_v24 = vpop.f32.mrb[0].mxu1 }
 0x262   :  { %v526_v25 = vpop.f32.mrb[1].mxu1 }
 0x263   :  { %v1589_v26 = vpop.f32.mrb[2].mxu1 }
 0x264   :  { %v590_v27 = vpack.c.bf16 %v1589_v26, %v1588_v24  ;;  %v529_v28 = vpop.f32.mrb[3].mxu1 }
 0x265   :  { %v589_v29 = vpack.c.bf16 %v529_v28, %v526_v25 }
 0x267   :  { %1602 = vmatprep.subr.bf16.mxu0 %v589_v29 }
 0x268   :  { %1603 = vmatpush3.bf16.msra.mxu0 %v589_v29 }
 0x269   :  { %v1592_v30 = vpop.f32.mrb[4].mxu1  ;;  %1604 = vmatprep.subr.bf16.mxu0 %v590_v27 }
 0x26a   :  { %v542_v31 = vpop.f32.mrb[5].mxu1 }
 0x26b   :  { %v1593_v32 = vpop.f32.mrb[6].mxu1 }
 0x26c   :  { %v592_v33 = vpack.c.bf16 %v1593_v32, %v1592_v30  ;;  %v545_v34 = vpop.f32.mrb[7].mxu1  ;;  %1605 = vmatpush3.bf16.msra.mxu0 %v590_v27 }
 0x26d   :  { %v591_v35 = vpack.c.bf16 %v545_v34, %v542_v31 }
 0x26f   :  { %1606 = vmatprep.subr.bf16.mxu0 %v591_v35 }
 0x270   :  { %1607 = vmatpush3.bf16.msra.mxu0 %v591_v35 }
 0x271   :  { %v1596_v36 = vpop.f32.mrb[8].mxu1  ;;  %1608 = vmatprep.subr.bf16.mxu0 %v592_v33 }
 0x272   :  { %v558_v37 = vpop.f32.mrb[9].mxu1 }
 0x273   :  { %v1597_v38 = vpop.f32.mrb[10].mxu1 }
 0x274   :  { %v594_v39 = vpack.c.bf16 %v1597_v38, %v1596_v36  ;;  %v561_v40 = vpop.f32.mrb[11].mxu1  ;;  %1609 = vmatpush3.bf16.msra.mxu0 %v592_v33 }
 0x275   :  { %v593_v41 = vpack.c.bf16 %v561_v40, %v558_v37 }
 0x277   :  { %1610 = vmatprep.subr.bf16.mxu0 %v593_v41 }
 0x278   :  { %1611 = vmatpush3.bf16.msra.mxu0 %v593_v41 }
 0x279   :  { %v1600_v42 = vpop.f32.mrb[12].mxu1  ;;  %1612 = vmatprep.subr.bf16.mxu0 %v594_v39 }
 0x27a   :  { %v574_v43 = vpop.f32.mrb[13].mxu1 }
 0x27b   :  { %v1601_v44 = vpop.f32.mrb[14].mxu1 }
 0x27c   :  { %v596_v45 = vpack.c.bf16 %v1601_v44, %v1600_v42  ;;  %v577_v46 = vpop.f32.mrb[15].mxu1  ;;  %1613 = vmatpush3.bf16.msra.mxu0 %v594_v39 }
 0x27d   :  { %v595_v47 = vpack.c.bf16 %v577_v46, %v574_v43 }
 0x27f   :  { %1614 = vmatprep.subr.bf16.mxu0 %v595_v47 }
 0x280   :  { %1615 = vmatpush3.bf16.msra.mxu0 %v595_v47 }
 0x281   :  { %1616 = vmatprep.subr.bf16.mxu0 %v596_v45 }
 0x284   :  { %1617 = vmatpush3.bf16.msra.mxu0 %v596_v45 }
 0x287   :  { %1619 = vmatmul.mubr.bf16.vlgmr.msra.gmra.mrb[16].mxu0 %v2279_v48 }
 0x288   :  { %1622 = vmatprep.mubr.bf16.mxu0 %v2281_v49 }
 0x28f   :  { %1623 = vmatmul.mubr.bf16.gmra.mrb[20].mxu0 %v2285_v50 }
 0x290   :  { %1626 = vmatprep.mubr.bf16.mxu0 %v2287_v51 }
 0x297   :  { %1627 = vmatmul.mubr.bf16.gmra.mrb[24].mxu0 %v2291_v52 }
 0x298   :  { %1630 = vmatprep.mubr.bf16.mxu0 %v2293_v53 }
 0x29f   :  { %1631 = vmatmul.mubr.bf16.gmra.mrb[28].mxu0 %v2297_v54 }
 0x2a0   :  { %1682 = vmatprep.mubr.bf16.mxu0 %v2276_v17 }
 0x35a   :  { %v1620_v58 = vpop.f32.mrb[16].mxu0 }
 0x35b   :  { %v694_v59 = vadd.f32 %v1620_v58, %v1394_v57  ;;  %v685_v60 = vpop.f32.mrb[17].mxu0 }
 0x35c   :  { %v686_v61 = vadd.f32 %v1394_v57, %v685_v60  ;;  %v1621_v62 = vpop.f32.mrb[18].mxu0 }
 0x35d   :  { %v697_v63 = vadd.f32 %v1621_v62, %v1394_v57  ;;  %v688_v0 = vpop.f32.mrb[19].mxu0  ;;  %v750_v2 = vmax.f32 %v694_v59, 0.0 }
 0x35e   :  { %v689_v1 = vadd.f32 %v1394_v57, %v688_v0  ;;  %v748_v4 = vmax.f32 %v686_v61, 0.0 }
 0x35f   :  { %v751_v3 = vmax.f32 %v697_v63, 0.0 }
 0x360   :  { %v749_v5 = vmax.f32 %v689_v1, 0.0 }
 0x361   :  { %v765_v6 = vpack.c.bf16 %v751_v3, %v750_v2 }
 0x362   :  { %v764_v7 = vpack.c.bf16 %v749_v5, %v748_v4  ;;  %v1624_v8 = vpop.f32.mrb[20].mxu0 }
 0x363   :  { %v710_v9 = vadd.f32 %v1624_v8, %v1394_v57  ;;  %v701_v10 = vpop.f32.mrb[21].mxu0 }
 0x364   :  { %v702_v11 = vadd.f32 %v1394_v57, %v701_v10  ;;  %v1625_v12 = vpop.f32.mrb[22].mxu0  ;;  %1650 = vmatprep.mubr.bf16.mxu1 %v764_v7 }
 0x365   :  { %v713_v13 = vadd.f32 %v1625_v12, %v1394_v57  ;;  %v704_v14 = vpop.f32.mrb[23].mxu0  ;;  %1651 = vmatmul.mubr.bf16.vlgmr.msra.gmra.mrb[16].mxu1 %v765_v6  ;;  %v754_v16 = vmax.f32 %v710_v9, 0.0 }
 0x366   :  { %v705_v15 = vadd.f32 %v1394_v57, %v704_v14  ;;  %v752_v18 = vmax.f32 %v702_v11, 0.0 }
 0x367   :  { %v755_v17 = vmax.f32 %v713_v13, 0.0 }
 0x368   :  { %v753_v19 = vmax.f32 %v705_v15, 0.0 }
 0x369   :  { %v767_v20 = vpack.c.bf16 %v755_v17, %v754_v16  ;;  %v2050_v17 = vmov 0.0  }
 0x36a   :  { %v766_v21 = vpack.c.bf16 %v753_v19, %v752_v18  ;;  %v1628_v22 = vpop.f32.mrb[24].mxu0  ;;  %1698 = vmatprep.subr.bf16.mxu1 %v2050_v17  ;;  %v1411_v18 = vld [vmem:[%s2370_s8] ss:$0 sm:$0xff] }
 0x36b   :  { %v726_v23 = vadd.f32 %v1628_v22, %v1394_v57  ;;  %v717_v24 = vpop.f32.mrb[25].mxu0 }
 0x36c   :  { %v718_v25 = vadd.f32 %v1394_v57, %v717_v24  ;;  %v1629_v26 = vpop.f32.mrb[26].mxu0  ;;  %1654 = vmatprep.mubr.bf16.mxu1 %v766_v21 }
 0x36d   :  { %v729_v27 = vadd.f32 %v1629_v26, %v1394_v57  ;;  %v720_v28 = vpop.f32.mrb[27].mxu0  ;;  %1655 = vmatmul.mubr.bf16.gmra.mrb[20].mxu1 %v767_v20  ;;  %v758_v30 = vmax.f32 %v726_v23, 0.0 }
 0x36e   :  { %v721_v29 = vadd.f32 %v1394_v57, %v720_v28  ;;  %v756_v32 = vmax.f32 %v718_v25, 0.0 }
 0x36f   :  { %v759_v31 = vmax.f32 %v729_v27, 0.0 }
 0x370   :  { %v757_v33 = vmax.f32 %v721_v29, 0.0 }
 0x371   :  { %v769_v34 = vpack.c.bf16 %v759_v31, %v758_v30 }
 0x372   :  { %v768_v35 = vpack.c.bf16 %v757_v33, %v756_v32  ;;  %v1632_v36 = vpop.f32.mrb[28].mxu0 }
 0x373   :  { %v742_v37 = vadd.f32 %v1632_v36, %v1394_v57  ;;  %v733_v38 = vpop.f32.mrb[29].mxu0 }
 0x374   :  { %v734_v39 = vadd.f32 %v1394_v57, %v733_v38  ;;  %v1633_v40 = vpop.f32.mrb[30].mxu0  ;;  %1658 = vmatprep.mubr.bf16.mxu1 %v768_v35 }
 0x375   :  { %v745_v41 = vadd.f32 %v1633_v40, %v1394_v57  ;;  %v736_v42 = vpop.f32.mrb[31].mxu0  ;;  %1659 = vmatmul.mubr.bf16.gmra.mrb[24].mxu1 %v769_v34  ;;  %v762_v44 = vmax.f32 %v742_v37, 0.0 }
 0x376   :  { %v737_v43 = vadd.f32 %v1394_v57, %v736_v42  ;;  %v760_v46 = vmax.f32 %v734_v39, 0.0 }
 0x377   :  { %v763_v45 = vmax.f32 %v745_v41, 0.0 }
 0x378   :  { %v761_v47 = vmax.f32 %v737_v43, 0.0 }
 0x379   :  { %v771_v55 = vpack.c.bf16 %v763_v45, %v762_v44 }
 0x37a   :  { %v770_v56 = vpack.c.bf16 %v761_v47, %v760_v46 }
 0x37c   :  { %1662 = vmatprep.mubr.bf16.mxu1 %v770_v56 }
 0x37d   :  { %1663 = vmatmul.mubr.bf16.gmra.mrb[28].mxu1 %v771_v55 }
 0x37e   :  { %1714 = vmatprep.mubr.msk.bf16.mxu1 %vm2051_vm0, %v2050_v17 }
 0x438   :  { %v1652_v58 = vpop.f32.mrb[16].mxu1 }
 0x439   :  { %v871_v59 = vpop.f32.mrb[17].mxu1 }
 0x43a   :  { %v1653_v60 = vpop.f32.mrb[18].mxu1 }
 0x43b   :  { %v935_v61 = vpack.c.bf16 %v1653_v60, %v1652_v58  ;;  %v874_v62 = vpop.f32.mrb[19].mxu1 }
 0x43c   :  { %v934_v63 = vpack.c.bf16 %v874_v62, %v871_v59 }
 0x43e   :  { %1666 = vmatprep.subr.bf16.mxu0 %v934_v63 }
 0x43f   :  { %1667 = vmatpush3.bf16.msra.mxu0 %v934_v63 }
 0x440   :  { %v1656_v0 = vpop.f32.mrb[20].mxu1  ;;  %1668 = vmatprep.subr.bf16.mxu0 %v935_v61 }
 0x441   :  { %v887_v1 = vpop.f32.mrb[21].mxu1 }
 0x442   :  { %v1657_v57 = vpop.f32.mrb[22].mxu1 }
 0x443   :  { %v937_v2 = vpack.c.bf16 %v1657_v57, %v1656_v0  ;;  %v890_v3 = vpop.f32.mrb[23].mxu1  ;;  %1669 = vmatpush3.bf16.msra.mxu0 %v935_v61 }
 0x444   :  { %v936_v4 = vpack.c.bf16 %v890_v3, %v887_v1 }
 0x446   :  { %1670 = vmatprep.subr.bf16.mxu0 %v936_v4 }
 0x447   :  { %1671 = vmatpush3.bf16.msra.mxu0 %v936_v4 }
 0x448   :  { %v1660_v5 = vpop.f32.mrb[24].mxu1  ;;  %1672 = vmatprep.subr.bf16.mxu0 %v937_v2 }
 0x449   :  { %v903_v6 = vpop.f32.mrb[25].mxu1 }
 0x44a   :  { %v1661_v7 = vpop.f32.mrb[26].mxu1 }
 0x44b   :  { %v939_v8 = vpack.c.bf16 %v1661_v7, %v1660_v5  ;;  %v906_v9 = vpop.f32.mrb[27].mxu1  ;;  %1673 = vmatpush3.bf16.msra.mxu0 %v937_v2 }
 0x44c   :  { %v938_v10 = vpack.c.bf16 %v906_v9, %v903_v6 }
 0x44e   :  { %1674 = vmatprep.subr.bf16.mxu0 %v938_v10 }
 0x44f   :  { %1675 = vmatpush3.bf16.msra.mxu0 %v938_v10 }
 0x450   :  { %v1664_v11 = vpop.f32.mrb[28].mxu1  ;;  %1676 = vmatprep.subr.bf16.mxu0 %v939_v8 }
 0x451   :  { %v919_v12 = vpop.f32.mrb[29].mxu1 }
 0x452   :  { %v1665_v13 = vpop.f32.mrb[30].mxu1 }
 0x453   :  { %v941_v14 = vpack.c.bf16 %v1665_v13, %v1664_v11  ;;  %v922_v15 = vpop.f32.mrb[31].mxu1  ;;  %1677 = vmatpush3.bf16.msra.mxu0 %v939_v8 }
 0x454   :  { %v940_v16 = vpack.c.bf16 %v922_v15, %v919_v12 }
 0x456   :  { %1678 = vmatprep.subr.bf16.mxu0 %v940_v16 }
 0x457   :  { %1679 = vmatpush3.bf16.msra.mxu0 %v940_v16 }
 0x458   :  { %1680 = vmatprep.subr.bf16.mxu0 %v941_v14 }
 0x45b   :  { %1681 = vmatpush3.bf16.msra.mxu0 %v941_v14 }
 0x45c   :  { %1718 = vmatprep.subr.bf16.mxu0 %v2050_v17 }
 0x45e   :  { %1683 = vmatmul.mubr.bf16.vlgmr.msra.gmra.mrb[32].mxu0 %v2279_v48  ;;  %v1814_v48 = vld [vmem:[#allocation13] sm:$0xff]  }
 0x45f   :  { %1686 = vmatprep.mubr.bf16.mxu0 %v2281_v49  ;;  %1719 = vmatpush3.bf16.msra.mxu0 %v1814_v48  ;;  %v1815_v49 = vld [vmem:[#allocation13 + $0x8] sm:$0xff]  }
 0x460   :  { %1720 = vmatprep.subr.bf16.mxu0 %v2050_v17 }
 0x463   :  { %1721 = vmatpush3.bf16.msra.mxu0 %v1815_v49  ;;  %v1813_v49 = vld [vmem:[#allocation5] sm:$0xff]  }
 0x464   :  { %1722 = vmatprep.subr.bf16.mxu0 %v2050_v17 }
 0x466   :  { %1687 = vmatmul.mubr.bf16.gmra.mrb[36].mxu0 %v2285_v50  ;;  %v1816_v50 = vld [vmem:[#allocation13 + $0x10] sm:$0xff]  }
 0x467   :  { %1690 = vmatprep.mubr.bf16.mxu0 %v2287_v51  ;;  %1723 = vmatpush3.bf16.msra.mxu0 %v1816_v50  ;;  %v1817_v51 = vld [vmem:[#allocation13 + $0x18] sm:$0xff]  }
 0x468   :  { %1724 = vmatprep.subr.bf16.mxu0 %v2050_v17  ;;  %v1821_v50 = vld [vmem:[#allocation13 + $0x38] sm:$0xff]  }
 0x46b   :  { %1725 = vmatpush3.bf16.msra.mxu0 %v1817_v51  ;;  %v1822_v51 = vld [vmem:[#allocation14] sm:$0xff]  }
 0x46c   :  { %1726 = vmatprep.subr.bf16.mxu0 %v2050_v17 }
 0x46e   :  { %1691 = vmatmul.mubr.bf16.gmra.mrb[40].mxu0 %v2291_v52  ;;  %v1818_v52 = vld [vmem:[#allocation13 + $0x20] sm:$0xff]  }
 0x46f   :  { %1694 = vmatprep.mubr.bf16.mxu0 %v2293_v53  ;;  %1727 = vmatpush3.bf16.msra.mxu0 %v1818_v52  ;;  %v1819_v53 = vld [vmem:[#allocation13 + $0x28] sm:$0xff]  }
 0x470   :  { %1728 = vmatprep.subr.bf16.mxu0 %v2050_v17  ;;  %v1823_v52 = vld [vmem:[#allocation14 + $0x8] sm:$0xff]  }
 0x473   :  { %1729 = vmatpush3.bf16.msra.mxu0 %v1819_v53  ;;  %v1824_v53 = vld [vmem:[#allocation14 + $0x10] sm:$0xff]  }
 0x474   :  { %1730 = vmatprep.subr.bf16.mxu0 %v2050_v17 }
 0x476   :  { %1695 = vmatmul.mubr.bf16.gmra.mrb[44].mxu0 %v2297_v54  ;;  %v1820_v54 = vld [vmem:[#allocation13 + $0x30] sm:$0xff]  }
 0x477   :  { %1734 = vmatprep.mubr.msk.bf16.mxu0 %vm2051_vm0, %v2050_v17  ;;  %1731 = vmatpush3.bf16.msra.mxu0 %v1820_v54  ;;  %v1825_v54 = vld [vmem:[#allocation14 + $0x18] sm:$0xff]  }
 0x478   :  { %1732 = vmatprep.subr.bf16.mxu0 %v2050_v17 }
 0x47b   :  { %1733 = vmatpush3.bf16.msra.mxu0 %v1821_v50 }
 0x531   :  { %v1684_v19 = vpop.f32.mrb[32].mxu0 }
 0x532   :  { %v991_v20 = vadd.f32 %v1684_v19, %v1411_v18  ;;  %v982_v21 = vpop.f32.mrb[33].mxu0  ;;  %v1827_v19 = vld [vmem:[#allocation14 + $0x28] sm:$0xff]  }
 0x533   :  { %v983_v22 = vadd.f32 %v1411_v18, %v982_v21  ;;  %v1685_v23 = vpop.f32.mrb[34].mxu0 }
 0x534   :  { %v994_v24 = vadd.f32 %v1685_v23, %v1411_v18  ;;  %v985_v25 = vpop.f32.mrb[35].mxu0  ;;  %v1047_v27 = vmax.f32 %v991_v20, 0.0 }
 0x535   :  { %v986_v26 = vadd.f32 %v1411_v18, %v985_v25  ;;  %v1045_v29 = vmax.f32 %v983_v22, 0.0  ;;  %v1828_v25 = vld [vmem:[#allocation14 + $0x30] sm:$0xff]  }
 0x536   :  { %v1048_v28 = vmax.f32 %v994_v24, 0.0 }
 0x537   :  { %v1046_v30 = vmax.f32 %v986_v26, 0.0  ;;  %v1829_v26 = vld [vmem:[#allocation14 + $0x38] sm:$0xff]  }
 0x538   :  { %v1062_v31 = vpack.c.bf16 %v1048_v28, %v1047_v27  ;;  %v1413_v27 = vld [vmem:[%s2372_s10] ss:$0 sm:$0xff]  ;;  %s2006_s10 = scalar_lea.vmem %s1354_s22, 256 }
 0x539   :  { %v1061_v32 = vpack.c.bf16 %v1046_v30, %v1045_v29  ;;  %v1688_v33 = vpop.f32.mrb[36].mxu0  ;;  %p2007_p8 = scmp.ne.s32.totalorder %s1354_s22, %s2006_s10  ;;  %p2012_p10 = scmp.lt.s32.totalorder %s2006_s10, %s2006_s10 }
 0x53a   :  { %v1007_v34 = vadd.f32 %v1688_v33, %v1411_v18  ;;  %v998_v35 = vpop.f32.mrb[37].mxu0 }
 0x53b   :  { %v999_v36 = vadd.f32 %v1411_v18, %v998_v35  ;;  %v1689_v37 = vpop.f32.mrb[38].mxu0  ;;  %1699 = vmatpush3.bf16.msra.mxu1 %v1061_v32  ;;  %p2013_p11 = por %p2012_p10, %p2011_p9 }
 0x53c   :  { %v1010_v38 = vadd.f32 %v1689_v37, %v1411_v18  ;;  %v1001_v39 = vpop.f32.mrb[39].mxu0  ;;  %1700 = vmatprep.subr.bf16.mxu1 %v2050_v17  ;;  %v1051_v41 = vmax.f32 %v1007_v34, 0.0 }
 0x53d   :  { %v1002_v40 = vadd.f32 %v1411_v18, %v1001_v39  ;;  %v1049_v43 = vmax.f32 %v999_v36, 0.0  ;;  %p2014_p12 = pnand %p2013_p11, %p2007_p8 }
 0x53e   :  { %v1052_v42 = vmax.f32 %v1010_v38, 0.0 }
 0x53f   :  { %v1050_v44 = vmax.f32 %v1002_v40, 0.0  ;;  %1701 = vmatpush3.bf16.msra.mxu1 %v1062_v31 }
 0x540   :  { %v1064_v45 = vpack.c.bf16 %v1052_v42, %v1051_v41  ;;  %1702 = vmatprep.subr.bf16.mxu1 %v2050_v17 }
 0x541   :  { %v1063_v46 = vpack.c.bf16 %v1050_v44, %v1049_v43  ;;  %v1692_v47 = vpop.f32.mrb[40].mxu0 }
 0x542   :  { %v1023_v55 = vadd.f32 %v1692_v47, %v1411_v18  ;;  %v1014_v56 = vpop.f32.mrb[41].mxu0 }
 0x543   :  { %v1015_v58 = vadd.f32 %v1411_v18, %v1014_v56  ;;  %v1693_v59 = vpop.f32.mrb[42].mxu0  ;;  %1703 = vmatpush3.bf16.msra.mxu1 %v1063_v46 }
 0x544   :  { %v1026_v60 = vadd.f32 %v1693_v59, %v1411_v18  ;;  %v1017_v61 = vpop.f32.mrb[43].mxu0  ;;  %1704 = vmatprep.subr.bf16.mxu1 %v2050_v17  ;;  %v1055_v63 = vmax.f32 %v1023_v55, 0.0 }
 0x545   :  { %v1018_v62 = vadd.f32 %v1411_v18, %v1017_v61  ;;  %v1053_v1 = vmax.f32 %v1015_v58, 0.0 }
 0x546   :  { %v1056_v0 = vmax.f32 %v1026_v60, 0.0 }
 0x547   :  { %v1054_v57 = vmax.f32 %v1018_v62, 0.0  ;;  %1705 = vmatpush3.bf16.msra.mxu1 %v1064_v45 }
 0x548   :  { %v1066_v2 = vpack.c.bf16 %v1056_v0, %v1055_v63  ;;  %1706 = vmatprep.subr.bf16.mxu1 %v2050_v17 }
 0x549   :  { %v1065_v3 = vpack.c.bf16 %v1054_v57, %v1053_v1  ;;  %v1696_v4 = vpop.f32.mrb[44].mxu0 }
 0x54a   :  { %v1039_v5 = vadd.f32 %v1696_v4, %v1411_v18  ;;  %v1030_v6 = vpop.f32.mrb[45].mxu0 }
 0x54b   :  { %v1031_v7 = vadd.f32 %v1411_v18, %v1030_v6  ;;  %v1697_v8 = vpop.f32.mrb[46].mxu0  ;;  %1707 = vmatpush3.bf16.msra.mxu1 %v1065_v3 }
 0x54c   :  { %v1042_v9 = vadd.f32 %v1697_v8, %v1411_v18  ;;  %v1033_v10 = vpop.f32.mrb[47].mxu0  ;;  %1708 = vmatprep.subr.bf16.mxu1 %v2050_v17  ;;  %v1059_v12 = vmax.f32 %v1039_v5, 0.0 }
 0x54d   :  { %v1034_v11 = vadd.f32 %v1411_v18, %v1033_v10  ;;  %v1057_v14 = vmax.f32 %v1031_v7, 0.0  ;;  %v1826_v18 = vld [vmem:[#allocation14 + $0x20] sm:$0xff]  }
 0x54e   :  { %v1060_v13 = vmax.f32 %v1042_v9, 0.0 }
 0x54f   :  { %v1058_v15 = vmax.f32 %v1034_v11, 0.0  ;;  %1709 = vmatpush3.bf16.msra.mxu1 %v1066_v2 }
 0x550   :  { %v1068_v16 = vpack.c.bf16 %v1060_v13, %v1059_v12  ;;  %1710 = vmatprep.subr.bf16.mxu1 %v2050_v17 }
 0x551   :  { %v1067_v48 = vpack.c.bf16 %v1058_v15, %v1057_v14 }
 0x553   :  { %1711 = vmatpush3.bf16.msra.mxu1 %v1067_v48 }
 0x554   :  { %1712 = vmatprep.subr.bf16.mxu1 %v2050_v17 }
 0x557   :  { %1713 = vmatpush3.bf16.msra.mxu1 %v1068_v16 }
 0x558   :  { %1738 = vmatprep.subr.bf16.mxu1 %v2050_v17 }
 0x55a   :  { %1715 = vmatmul.mubr.bf16.vlgmr.msra.gmra.mrb[32].mxu1 %v1813_v49 }
 0x55b   :  { %1754 = vmatprep.mubr.msk.bf16.mxu1 %vm2051_vm0, %v2050_v17  ;;  %1739 = vmatpush3.bf16.msra.mxu1 %v1822_v51 }
 0x55c   :  { %1740 = vmatprep.subr.bf16.mxu1 %v2050_v17 }
 0x55f   :  { %1741 = vmatpush3.bf16.msra.mxu1 %v1823_v52 }
 0x560   :  { %1742 = vmatprep.subr.bf16.mxu1 %v2050_v17 }
 0x563   :  { %1743 = vmatpush3.bf16.msra.mxu1 %v1824_v53 }
 0x564   :  { %1744 = vmatprep.subr.bf16.mxu1 %v2050_v17 }
 0x567   :  { %1745 = vmatpush3.bf16.msra.mxu1 %v1825_v54 }
 0x568   :  { %1746 = vmatprep.subr.bf16.mxu1 %v2050_v17 }
 0x56b   :  { %1747 = vmatpush3.bf16.msra.mxu1 %v1826_v18 }
 0x56c   :  { %1748 = vmatprep.subr.bf16.mxu1 %v2050_v17 }
 0x56f   :  { %1749 = vmatpush3.bf16.msra.mxu1 %v1827_v19 }
 0x570   :  { %1750 = vmatprep.subr.bf16.mxu1 %v2050_v17 }
 0x573   :  { %1751 = vmatpush3.bf16.msra.mxu1 %v1828_v25 }
 0x574   :  { %1752 = vmatprep.subr.bf16.mxu1 %v2050_v17  ;;  %v1422_v17 = vld [vmem:[%s2374_s12] ss:$0 sm:$0xff] }
 0x577   :  { %1753 = vmatpush3.bf16.msra.mxu1 %v1829_v26 }
 0x62d   :  { %v1111_v20 = vpop.f32.mrb[32].mxu1 }
 0x62e   :  { %v1716_v21 = vpop.f32.mrb[33].mxu1 }
 0x62f   :  { %v1114_v22 = vpop.f32.mrb[34].mxu1 }
 0x630   :  { %v1118_v23 = vpack.c.bf16 %v1114_v22, %v1111_v20  ;;  %v1717_v24 = vpop.f32.mrb[35].mxu1 }
 0x632   :  { %1735 = vmatmul.mubr.bf16.vlgmr.msra.gmra.mrb[48].mxu0 %v1118_v23 }
 0x705   :  { %v1224_v28 = vpop.f32.mrb[48].mxu0 }
 0x706   :  { %v1225_v29 = vadd.f32 %v1413_v27, %v1224_v28  ;;  %v1736_v30 = vpop.f32.mrb[49].mxu0 }
 0x707   :  { %v1227_v31 = vpop.f32.mrb[50].mxu0 }
 0x708   :  { %v1228_v32 = vadd.f32 %v1413_v27, %v1227_v31  ;;  %v1737_v33 = vpop.f32.mrb[51].mxu0  ;;  %v1231_v34 = vmax.f32 %v1225_v29, 0.0 }
 0x70a   :  { %v1232_v35 = vmax.f32 %v1228_v32, 0.0 }
 0x70c   :  { %v1233_v36 = vpack.c.bf16 %v1232_v35, %v1231_v34 }
 0x70e   :  { %1755 = vmatmul.mubr.bf16.vlgmr.msra.gmra.mrb[36].mxu1 %v1233_v36 }
 0x7e1   :  { %v1339_v37 = vpop.f32.mrb[36].mxu1 }
 0x7e2   :  { %v1340_v38 = vadd.f32 %v1422_v17, %v1339_v37  ;;  %v1756_v39 = vpop.f32.mrb[37].mxu1 }
 0x7e3   :  { %v1342_v40 = vpop.f32.mrb[38].mxu1 }
 0x7e4   :  { %1346 = vst [vmem:[#allocation16] sm:$0xff] %v1340_v38  ;;  %v1343_v41 = vadd.f32 %v1422_v17, %v1342_v40  ;;  %v1757_v42 = vpop.f32.mrb[39].mxu1 }
 0x7e6   :  { %1347 = vst [vmem:[#allocation16 + $0x8] sm:$0xff] %v1343_v41 }
 0x7e7   :  { %2017 = shalt.err (!%p2014_p12)
}
 0x7e8   :  { %s2018_s23 = scalar_lea.hbm %s2375_s13, 256 }
 0x7e9   :  { %p2019_p13 = scmp.ne.s32.totalorder %s2375_s13, %s2018_s23  ;;  %p2022_p0 = scmp.lt.u32.totalorder %s2018_s23, %s2375_s13 }
 0x7eb   :  { %p2024_p1 = pnand %p2022_p0, %p2019_p13 }
 0x7ed   :  { %2027 = shalt.err (!%p2024_p1)
}
 0x7ee   :  { %s2053_s7 = smov 128   ;;  %s2054_s18 = smov 8  }
 0x7ef   :  { %1359 = dma.vmem_to_hbm [thread:$0]  %s1354_s22, 256, %s2375_s13, [#allocation4], %s2053_s7, %s2053_s7, %s2054_s18  }
 0x7f0   :  { %2038 = dma.done.wait [#allocation4], 256  }
 0x7f1   :  { %2039 = vsyncadd [#allocation4], 4294967040 }
 0x7f2   :  { %1363 = vsyncpa [#allocation3], 1 }
 0x7f3   :  { %1364 = vsyncpa [#allocation6], 1 }
 0x7f4   :  { %1365 = vsyncpa [#allocation9], 1 }
 0x7f5   :  { %1366 = vsyncpa [#allocation12], 1 }
 0x7f6   :  { %1367 = vsyncpa [#allocation15], 1 }
 0x7f7   :  { %1368 = vsyncpa [#allocation4], 1 }

</bundles_post_ra>
